<compile_context>
chip_gen: v7x
topology: tpu7x:2x2x1
jax: 0.10.0
libtpu: 0.0.40
codegen_flags: <defaults>
</compile_context>

<pallas_src>
import functools

import jax
import jax.numpy as jnp
from jax.experimental import pallas as pl
from jax.experimental.pallas import tpu as pltpu


def _gaussian_smearing_kernel(dist_ref, offset_ref, out_ref, *, coeff):
    # dist_ref  : VMEM (TB, 1)      float32
    # offset_ref: VMEM (1, R_pad)   float32 (lane-dense, R padded to mult of 128)
    # out_ref   : VMEM (TB, R_pad)  float32
    d = dist_ref[...]                      # (TB, 1)
    o = offset_ref[...]                    # (1, R_pad)
    diff = d - o                           # broadcast -> (TB, R_pad)
    out_ref[...] = jnp.exp(coeff * diff * diff)


def make_gaussian_smearing(num_rbf=50, rbound_upper=5.0, rbound_lower=0.0):
    """Builds (offset, coeff) exactly as the PyTorch __init__ does.

    coeff is returned as a plain Python float so it can be baked into the
    kernel as a compile-time constant (it is derived from static ctor args).
    """
    offset = jnp.linspace(rbound_lower, rbound_upper, num_rbf, dtype=jnp.float32)
    if num_rbf > 1:
        margin = offset[1] - offset[0]
    else:
        margin = jnp.float32(rbound_upper - rbound_lower)
    coeff = float(-0.5 / margin ** 2)
    return offset, coeff


@functools.partial(jax.jit, static_argnames=("coeff", "block_b"))
def gaussian_smearing(dist, offset, coeff, *, block_b=1024):
    """dist: (B, 1) -> (B, num_rbf) float32, out = exp(coeff * (dist - offset)^2)."""
    B = dist.shape[0]
    R = offset.shape[0]

    # --- pad the RBF axis to a multiple of 128 lanes (lane-dense output) ---
    # Padded offset lanes are 0.0, which yields finite (discarded) exp values.
    R_pad = max(128, pl.cdiv(R, 128) * 128)
    offset_row = jnp.zeros((1, R_pad), jnp.float32).at[0, :R].set(
        offset.astype(jnp.float32))

    # --- pick an effective row tile and pad B up to a multiple of it -------
    if block_b % 8 != 0:
        block_b = pl.cdiv(block_b, 8) * 8
    B8 = pl.cdiv(B, 8) * 8                 # minimum sublane granularity
    tb = min(block_b, B8)                  # don't over-tile tiny batches
    B_pad = pl.cdiv(B, tb) * tb

    dist_f32 = dist.astype(jnp.float32)
    if B_pad != B:
        dist_f32 = jnp.pad(dist_f32, ((0, B_pad - B), (0, 0)))

    grid = (B_pad // tb,)
    kernel = functools.partial(_gaussian_smearing_kernel, coeff=coeff)

    out = pl.pallas_call(
        kernel,
        out_shape=jax.ShapeDtypeStruct((B_pad, R_pad), jnp.float32),
        grid_spec=pl.GridSpec(
            grid=grid,
            in_specs=[
                # One (tb, 1) slab of distances per grid step. The column is
                # lane-padded inside VMEM, but at these tile sizes that is
                # negligible vs. the (tb, R_pad) output writes that bind the
                # kernel.
                pl.BlockSpec((tb, 1), lambda i: (i, 0)),
                # The full (1, R_pad) offset row, replicated across steps.
                pl.BlockSpec((1, R_pad), lambda i: (0, 0)),
            ],
            out_specs=pl.BlockSpec((tb, R_pad), lambda i: (i, 0)),
        ),
        compiler_params=pltpu.CompilerParams(
            dimension_semantics=("parallel",)),
    )(dist_f32, offset_row)

    # Slice away row padding and lane padding.
    return out[:B, :R]


if __name__ == "__main__":
    num_rbf = 50
    B = 16

    offset, coeff = make_gaussian_smearing(num_rbf=num_rbf,
                                           rbound_upper=5.0,
                                           rbound_lower=0.0)

    key = jax.random.PRNGKey(0)
    # distances in [0, 5), shape (B, 1) as documented in the PyTorch forward
    dist = jax.random.uniform(key, (B, 1), dtype=jnp.float32,
                              minval=0.0, maxval=5.0)

    out = gaussian_smearing(dist, offset, coeff)
    out = jax.block_until_ready(out)

    # reference check in plain JAX (same math as torch.exp(c*(d-o)^2))
    ref = jnp.exp(coeff * (dist - offset[None, :]) ** 2)
    assert out.shape == (B, num_rbf)
    assert jnp.allclose(out, ref, atol=1e-6, rtol=1e-5)

    print("KERNEL_OK")
</pallas_src>

<mosaic_0001>
module attributes {stable_mosaic.version = 11 : i64} {
  func.func @_gaussian_smearing_kernel(%arg0: i32, %arg1: memref<16x1xf32, #tpu.memory_space<vmem>>, %arg2: memref<1x128xf32, #tpu.memory_space<vmem>>, %arg3: memref<16x128xf32, #tpu.memory_space<vmem>>) attributes {dimension_semantics = [#tpu.dimension_semantics<parallel>], iteration_bounds = array<i64: 1>, scalar_prefetch = 0 : i64, scratch_operands = 0 : i64, tpu.core_type = #tpu.core_type<tc>, window_params = [{transform_indices = @transform_0, window_bounds = array<i64: 16, 1>}, {pipeline_mode = #tpu.pipeline_mode<synchronous>, transform_indices = @transform_1, window_bounds = array<i64: 1, 128>}, {transform_indices = @transform_2, window_bounds = array<i64: 16, 128>}]} {
    %c0 = arith.constant 0 : index
    %c0_0 = arith.constant 0 : index
    %0 = vector.load %arg1[%c0, %c0_0] : memref<16x1xf32, #tpu.memory_space<vmem>>, vector<16x1xf32>
    %c0_1 = arith.constant 0 : index
    %c0_2 = arith.constant 0 : index
    %1 = vector.load %arg2[%c0_1, %c0_2] : memref<1x128xf32, #tpu.memory_space<vmem>>, vector<1x128xf32>
    %2 = vector.broadcast %0 : vector<16x1xf32> to vector<16x128xf32>
    %3 = vector.broadcast %1 : vector<1x128xf32> to vector<16x128xf32>
    %4 = arith.subf %2, %3 : vector<16x128xf32>
    %cst = arith.constant -48.0200043 : f32
    %5 = vector.broadcast %cst : f32 to vector<16x128xf32>
    %6 = arith.mulf %5, %4 : vector<16x128xf32>
    %7 = arith.mulf %6, %4 : vector<16x128xf32>
    %8 = math.exp %7 : vector<16x128xf32>
    %c0_3 = arith.constant 0 : index
    %c0_4 = arith.constant 0 : index
    %9 = vector.load %arg3[%c0_3, %c0_4] : memref<16x128xf32, #tpu.memory_space<vmem>>, vector<16x128xf32>
    tpu.vector_store %arg3[%c0_3, %c0_4], %8 {strides = array<i32>} : memref<16x128xf32, #tpu.memory_space<vmem>>, vector<16x128xf32>,
    return
  }
  func.func @transform_0(%arg0: i32) -> (i32, i32) {
    %c0_i32 = arith.constant 0 : i32
    %c0_i32_0 = arith.constant 0 : i32
    return %arg0, %c0_i32 : i32, i32
  }
  func.func @transform_1(%arg0: i32) -> (i32, i32) {
    %c0_i32 = arith.constant 0 : i32
    %c0_i32_0 = arith.constant 0 : i32
    %c0_i32_1 = arith.constant 0 : i32
    return %c0_i32, %c0_i32_0 : i32, i32
  }
  func.func @transform_2(%arg0: i32) -> (i32, i32) {
    %c0_i32 = arith.constant 0 : i32
    %c0_i32_0 = arith.constant 0 : i32
    return %arg0, %c0_i32 : i32, i32
  }
}

</mosaic_0001>

<bundles_post_ra>
// kernel: gaussian_smearing.1
= control target key start
LH: loop header
LB: loop body
LE: loop exit
PB: predicated region body
PF: predicated region fallthrough
CT: control target
= control target key end

     0   :  { %v93_v1 = vmov 0   ;;  %s133_s0 = inlined_call_operand.vmem [shape: f32[16,1], index: 0, kind: input, shape index: {}]   ;;  %s134_s1 = inlined_call_operand.vmem [shape: f32[1,128], index: 1, kind: input, shape index: {}]   ;;  %s135_s2 = inlined_call_operand.hbm [shape: f32[16,128], index: 2, kind: output, shape index: {}]  }
   0x1   :  { %v12_v0 = vld [vmem:[%s133_s0] sm:$0xff]  ;;  %64 = vset.pattern.permute.xlu0 %v93_v1 }
   0x2   :  { %7 = vsyncpa [#allocation3], 0  ;;  %17 = vperm.xlu0 %64, %v12_v0   ;;  %v13_v2 = vld [vmem:[%s133_s0 + $0x8] sm:$0xff]  ;;  %v59_v3 = vld [vmem:[%s134_s1] ss:$0 sm:$0xff]  ;;  %s94_s15 = smov [#allocation2]  }
   0x3   :  { %s48_s16 = sshll.u32 %s94_s15, 4  ;;  %s49_s16 = int_to_ptr.vmem [resolvable:$true] %s48_s16 }
   0x4   :  { %s69_s0 = scalar_lea.vmem %s49_s16, 256  ;;  %p74_p1 = scmp.lt.s32.totalorder %s49_s16, %s49_s16 }
   0x5   :  { %p70_p0 = scmp.ne.s32.totalorder %s49_s16, %s69_s0  ;;  %p75_p2 = scmp.lt.s32.totalorder %s69_s0, %s69_s0 }
   0x6   :  { %22 = vperm.xlu0 %64, %v13_v2  }
   0x7   :  { %p76_p3 = por %p75_p2, %p74_p1 }
   0x9   :  { %p77_p4 = pnand %p76_p3, %p70_p0 }
  0x81   :  { %v18_v4 = vpop.permute.xlu0 %17 }
  0x82   :  { %v31_v5 = vsub.f32 %v18_v4, %v59_v3 }
  0x84   :  { %v33_v6 = vmul.f32 -48.020004, %v31_v5 }
  0x85   :  { %v23_v7 = vpop.permute.xlu0 %22 }
  0x86   :  { %v35_v8 = vmul.f32 %v33_v6, %v31_v5  ;;  %v32_v9 = vsub.f32 %v23_v7, %v59_v3 }
  0x88   :  { %v37_v10 = vmul.f32 1.442695, %v35_v8  ;;  %v34_v11 = vmul.f32 -48.020004, %v32_v9 }
  0x8a   :  { %65 = vpow2.f32 %v37_v10  ;;  %v36_v12 = vmul.f32 %v34_v11, %v32_v9 }
  0x8c   :  { %v39_v13 = vmul.f32 1.442695, %v36_v12 }
  0x8e   :  { %67 = vpow2.f32 %v39_v13 }
  0x94   :  { %v66_v14 = vpop.eup %65 }
  0x95   :  { %41 = vst [vmem:[#allocation2] sm:$0xff] %v66_v14 }
  0x98   :  { %v68_v15 = vpop.eup %67 }
  0x99   :  { %42 = vst [vmem:[#allocation2 + $0x8] sm:$0xff] %v68_v15 }
  0x9a   :  { %80 = shalt.err (!%p77_p4)
}
  0x9b   :  { %s81_s18 = scalar_lea.hbm %s135_s2, 256 }
  0x9c   :  { %p82_p5 = scmp.ne.s32.totalorder %s135_s2, %s81_s18  ;;  %p85_p6 = scmp.lt.u32.totalorder %s81_s18, %s135_s2 }
  0x9e   :  { %p87_p7 = pnand %p85_p6, %p82_p5 }
  0xa0   :  { %90 = shalt.err (!%p87_p7)
}
  0xa1   :  { %s95_s23 = smov 128   ;;  %s96_s24 = smov 8  }
  0xa2   :  { %54 = dma.vmem_to_hbm [thread:$0]  %s49_s16, 256, %s135_s2, [#allocation3], %s95_s23, %s95_s23, %s96_s24  }
  0xa3   :  { %91 = dma.done.wait [#allocation3], 256  }
  0xa4   :  { %92 = vsyncadd [#allocation3], 4294967040 }
  0xa5   :  { %58 = vsyncpa [#allocation3], 1 }

</bundles_post_ra>
